<compile_context>
chip_gen: v7x
topology: tpu7x:2x2x1
jax: 0.10.0
libtpu: 0.0.40
codegen_flags: <defaults>
</compile_context>

<pallas_src>
import jax
import jax.numpy as jnp
from jax import lax
from jax.experimental import pallas as pl
from jax.experimental.pallas import tpu as pltpu


def _round_up(a, b):
    return (a + b - 1) // b * b


def _stable_softplus(x):
    # log(1 + exp(x)) computed without overflow; equals the naive form for
    # moderate x (matches nn.SoftMarginLoss semantics with y = +1).
    return jnp.maximum(x, 0.0) + jnp.log1p(jnp.exp(-jnp.abs(x)))


def _triplet_wrt_kernel(xq_ref, xk_ref, sqk_ref, tcol_ref, trow_ref, out_ref):
    xq = xq_ref[...]                                           # (tq, Dp) f32
    xk = xk_ref[...]                                           # (Nk, Dp) f32

    # Gram block on the MXU; contract both operands on their last dim so no
    # transpose of xk is materialized.
    gram = lax.dot_general(
        xq, xk,
        dimension_numbers=(((1,), (1,)), ((), ())),
        preferred_element_type=jnp.float32)                    # (tq, Nk)

    # Squared norms: query side from the row block (lane reduce, O(tq*D)),
    # key side precomputed in the wrapper as a lane-oriented (1, Nk) row.
    sq_q = jnp.sum(xq * xq, axis=1, keepdims=True)             # (tq, 1)
    sq_k = sqk_ref[...]                                        # (1, Nk)

    # Pairwise Euclidean distances, clamped like the PyTorch reference.
    dist = jnp.sqrt(jnp.maximum(sq_q + sq_k - 2.0 * gram, 1e-12))   # (tq, Nk)

    # Positive / negative masks from the labels (padded query rows have
    # sentinel label -1, so they match no real key; keys are never padded).
    is_pos = (tcol_ref[...] == trow_ref[...]).astype(jnp.float32)   # (tq, Nk)

    dist_ap = dist * is_pos
    dist_an = dist - dist_ap          # == dist * is_neg exactly (0/1 masks)

    # softmax_weights(dist_ap, is_pos), normalization folded into the reduce.
    max_ap = jnp.max(dist_ap, axis=1, keepdims=True)
    p = jnp.exp(dist_ap - max_ap) * is_pos
    z_ap = jnp.sum(p, axis=1, keepdims=True) + 1e-6
    furthest_positive = jnp.sum(dist_ap * p, axis=1, keepdims=True) / z_ap

    # softmax_weights(-dist_an, is_neg), same folding.
    is_neg = 1.0 - is_pos
    neg = -dist_an
    max_an = jnp.max(neg, axis=1, keepdims=True)
    q = jnp.exp(neg - max_an) * is_neg
    z_an = jnp.sum(q, axis=1, keepdims=True) + 1e-6
    closest_negative = jnp.sum(dist_an * q, axis=1, keepdims=True) / z_an

    # nn.SoftMarginLoss() per row with target y = +1: log(1 + exp(-(cn - fp))).
    margin = closest_negative - furthest_positive              # (tq, 1)
    out_ref[...] = _stable_softplus(-margin).astype(out_ref.dtype)


def triplet_loss_wrt(inputs, targets, normalize_feature=False):
    """JAX / Pallas equivalent of TripletLoss_WRT.forward."""
    x = inputs.astype(jnp.float32)
    if normalize_feature:
        x = x / (jnp.linalg.norm(x, ord=2, axis=-1, keepdims=True) + 1e-12)

    n, d = x.shape
    labels = targets.astype(jnp.int32)

    # Alignment / tiling choices.
    d_pad = _round_up(d, 128)                 # lane-full feature dim
    n_pad8 = _round_up(n, 8)                  # f32 sublane alignment
    tq = min(256, n_pad8)                     # query-row tile
    n_pad = _round_up(n, tq)                  # padded query-row count

    # Keys: unpadded rows (so is_neg == 1 - is_pos stays exact); padded lanes.
    xk = jnp.pad(x, ((0, 0), (0, d_pad - d)))                      # (n, d_pad)
    # Queries: padded rows (zero features) + padded lanes.
    xq = jnp.pad(x, ((0, n_pad - n), (0, d_pad - d)))              # (n_pad, d_pad)
    # Key-side squared norms as a lane-oriented row (avoids in-kernel transpose).
    sqk = jnp.sum(xk * xk, axis=1).reshape(1, n)                   # (1, n)
    # Labels: query column padded with sentinel -1, key row unpadded.
    tcol = jnp.pad(labels.reshape(n, 1), ((0, n_pad - n), (0, 0)),
                   constant_values=-1)                             # (n_pad, 1)
    trow = labels.reshape(1, n)                                    # (1, n)

    # VMEM budget for one grid step (double-buffered inputs + N x tq temps).
    est = 4 * (2 * tq * d_pad + 2 * n * d_pad + 12 * tq * n + 8 * tq)
    vmem_limit = int(min(max(est + (4 << 20), 32 << 20), 64 << 20))

    per_row = pl.pallas_call(
        _triplet_wrt_kernel,
        out_shape=jax.ShapeDtypeStruct((n_pad, 1), jnp.float32),
        grid=(n_pad // tq,),
        in_specs=[
            pl.BlockSpec((tq, d_pad), lambda i: (i, 0)),   # query row block
            pl.BlockSpec((n, d_pad), lambda i: (0, 0)),    # full keys (resident)
            pl.BlockSpec((1, n), lambda i: (0, 0)),        # key squared norms
            pl.BlockSpec((tq, 1), lambda i: (i, 0)),       # query labels
            pl.BlockSpec((1, n), lambda i: (0, 0)),        # key labels
        ],
        out_specs=pl.BlockSpec((tq, 1), lambda i: (i, 0)),
        compiler_params=pltpu.CompilerParams(
            dimension_semantics=("parallel",),
            vmem_limit_bytes=vmem_limit,
        ),
    )(xq, xk, sqk, tcol, trow)

    # Final mean over the N valid rows (padded rows are discarded here).
    return jnp.mean(per_row[:n, 0])


def _reference_loss(inputs, targets, normalize_feature=False):
    """Pure-JAX reference mirroring the PyTorch code, for sanity checking."""
    x = inputs.astype(jnp.float32)
    if normalize_feature:
        x = x / (jnp.linalg.norm(x, ord=2, axis=-1, keepdims=True) + 1e-12)
    sq = jnp.sum(x * x, axis=1, keepdims=True)
    dist = sq + sq.T - 2.0 * (x @ x.T)
    dist = jnp.sqrt(jnp.maximum(dist, 1e-12))
    t = targets.reshape(-1, 1)
    is_pos = (t == t.T).astype(jnp.float32)
    is_neg = 1.0 - is_pos
    dist_ap = dist * is_pos
    dist_an = dist * is_neg

    def softmax_weights(d, mask):
        max_v = jnp.max(d * mask, axis=1, keepdims=True)
        diff = d - max_v
        z = jnp.sum(jnp.exp(diff) * mask, axis=1, keepdims=True) + 1e-6
        return jnp.exp(diff) * mask / z

    w_ap = softmax_weights(dist_ap, is_pos)
    w_an = softmax_weights(-dist_an, is_neg)
    fp = jnp.sum(dist_ap * w_ap, axis=1)
    cn = jnp.sum(dist_an * w_an, axis=1)
    # mean(log(1 + exp(-(cn - fp)))) via the overflow-safe softplus form.
    return jnp.mean(_stable_softplus(-(cn - fp)))


if __name__ == "__main__":
    # Small deterministic example: batch N=8, feature dim D=32, 4 classes.
    key = jax.random.PRNGKey(0)
    k_feat, k_lbl = jax.random.split(key)
    N, D = 8, 32
    inputs = jax.random.normal(k_feat, (N, D), dtype=jnp.float32)
    targets = jax.random.randint(k_lbl, (N,), 0, 4, dtype=jnp.int32)

    loss = triplet_loss_wrt(inputs, targets, normalize_feature=False)
    loss = jax.block_until_ready(loss)
    ref = _reference_loss(inputs, targets, normalize_feature=False)
    assert jnp.allclose(loss, ref, rtol=1e-5, atol=1e-5), (loss, ref)

    loss_n = triplet_loss_wrt(inputs, targets, normalize_feature=True)
    loss_n = jax.block_until_ready(loss_n)
    ref_n = _reference_loss(inputs, targets, normalize_feature=True)
    assert jnp.allclose(loss_n, ref_n, rtol=1e-5, atol=1e-5), (loss_n, ref_n)

    print("KERNEL_OK")
</pallas_src>

<mosaic_0001>
module attributes {stable_mosaic.version = 11 : i64} {
  func.func @_triplet_wrt_kernel(%arg0: i32, %arg1: memref<8x128xf32, #tpu.memory_space<vmem>>, %arg2: memref<8x128xf32, #tpu.memory_space<vmem>>, %arg3: memref<1x8xf32, #tpu.memory_space<vmem>>, %arg4: memref<8x1xi32, #tpu.memory_space<vmem>>, %arg5: memref<1x8xi32, #tpu.memory_space<vmem>>, %arg6: memref<8x1xf32, #tpu.memory_space<vmem>>) attributes {dimension_semantics = [#tpu.dimension_semantics<parallel>], iteration_bounds = array<i64: 1>, scalar_prefetch = 0 : i64, scratch_operands = 0 : i64, tpu.core_type = #tpu.core_type<tc>, window_params = [{transform_indices = @transform_0, window_bounds = array<i64: 8, 128>}, {pipeline_mode = #tpu.pipeline_mode<synchronous>, transform_indices = @transform_1, window_bounds = array<i64: 8, 128>}, {pipeline_mode = #tpu.pipeline_mode<synchronous>, transform_indices = @transform_2, window_bounds = array<i64: 1, 8>}, {transform_indices = @transform_3, window_bounds = array<i64: 8, 1>}, {pipeline_mode = #tpu.pipeline_mode<synchronous>, transform_indices = @transform_4, window_bounds = array<i64: 1, 8>}, {transform_indices = @transform_5, window_bounds = array<i64: 8, 1>}]} {
    %c0 = arith.constant 0 : index
    %c0_0 = arith.constant 0 : index
    %0 = vector.load %arg1[%c0, %c0_0] : memref<8x128xf32, #tpu.memory_space<vmem>>, vector<8x128xf32>
    %c0_1 = arith.constant 0 : index
    %c0_2 = arith.constant 0 : index
    %1 = vector.load %arg2[%c0_1, %c0_2] : memref<8x128xf32, #tpu.memory_space<vmem>>, vector<8x128xf32>
    %cst = arith.constant dense<0.000000e+00> : vector<8x8xf32>
    %2 = tpu.matmul %0, %1, %cst {dimension_numbers = #tpu.dot_dimension_numbers<[1], [1], [0], [0], [0, 0, 1, 0], [], []>} : vector<8x128xf32>, vector<8x128xf32>, vector<8x8xf32> -> vector<8x8xf32>
    %3 = arith.mulf %0, %0 : vector<8x128xf32>
    %cst_3 = arith.constant dense<0.000000e+00> : vector<8xf32>
    %4 = vector.multi_reduction <add>, %3, %cst_3 [1] : vector<8x128xf32> to vector<8xf32>
    %5 = vector.shape_cast %4 : vector<8xf32> to vector<8x1xf32>
    %c0_4 = arith.constant 0 : index
    %c0_5 = arith.constant 0 : index
    %6 = vector.load %arg3[%c0_4, %c0_5] : memref<1x8xf32, #tpu.memory_space<vmem>>, vector<1x8xf32>
    %7 = vector.broadcast %5 : vector<8x1xf32> to vector<8x8xf32>
    %8 = vector.broadcast %6 : vector<1x8xf32> to vector<8x8xf32>
    %9 = arith.addf %7, %8 : vector<8x8xf32>
    %cst_6 = arith.constant 2.000000e+00 : f32
    %10 = vector.broadcast %cst_6 : f32 to vector<8x8xf32>
    %11 = arith.mulf %10, %2 : vector<8x8xf32>
    %12 = arith.subf %9, %11 : vector<8x8xf32>
    %cst_7 = arith.constant 9.99999996E-13 : f32
    %13 = vector.broadcast %cst_7 : f32 to vector<8x8xf32>
    %14 = arith.maximumf %12, %13 : vector<8x8xf32>
    %15 = math.sqrt %14 : vector<8x8xf32>
    %c0_8 = arith.constant 0 : index
    %c0_9 = arith.constant 0 : index
    %16 = vector.load %arg4[%c0_8, %c0_9] : memref<8x1xi32, #tpu.memory_space<vmem>>, vector<8x1xi32>
    %c0_10 = arith.constant 0 : index
    %c0_11 = arith.constant 0 : index
    %17 = vector.load %arg5[%c0_10, %c0_11] : memref<1x8xi32, #tpu.memory_space<vmem>>, vector<1x8xi32>
    %18 = vector.broadcast %16 : vector<8x1xi32> to vector<8x8xi32>
    %19 = vector.broadcast %17 : vector<1x8xi32> to vector<8x8xi32>
    %20 = arith.cmpi eq, %18, %19 : vector<8x8xi32>
    %21 = arith.extui %20 : vector<8x8xi1> to vector<8x8xi32>
    %22 = arith.sitofp %21 : vector<8x8xi32> to vector<8x8xf32>
    %23 = arith.mulf %15, %22 : vector<8x8xf32>
    %24 = arith.subf %15, %23 : vector<8x8xf32>
    %cst_12 = arith.constant dense<0xFF800000> : vector<8xf32>
    %25 = vector.multi_reduction <maximumf>, %23, %cst_12 [1] : vector<8x8xf32> to vector<8xf32>
    %26 = vector.shape_cast %25 : vector<8xf32> to vector<8x1xf32>
    %27 = vector.broadcast %26 : vector<8x1xf32> to vector<8x8xf32>
    %28 = arith.subf %23, %27 : vector<8x8xf32>
    %29 = math.exp %28 : vector<8x8xf32>
    %30 = arith.mulf %29, %22 : vector<8x8xf32>
    %cst_13 = arith.constant dense<0.000000e+00> : vector<8xf32>
    %31 = vector.multi_reduction <add>, %30, %cst_13 [1] : vector<8x8xf32> to vector<8xf32>
    %32 = vector.shape_cast %31 : vector<8xf32> to vector<8x1xf32>
    %cst_14 = arith.constant 9.99999997E-7 : f32
    %33 = vector.broadcast %cst_14 : f32 to vector<8x1xf32>
    %34 = arith.addf %32, %33 : vector<8x1xf32>
    %35 = arith.mulf %23, %30 : vector<8x8xf32>
    %cst_15 = arith.constant dense<0.000000e+00> : vector<8xf32>
    %36 = vector.multi_reduction <add>, %35, %cst_15 [1] : vector<8x8xf32> to vector<8xf32>
    %37 = vector.shape_cast %36 : vector<8xf32> to vector<8x1xf32>
    %38 = arith.divf %37, %34 : vector<8x1xf32>
    %cst_16 = arith.constant 1.000000e+00 : f32
    %39 = vector.broadcast %cst_16 : f32 to vector<8x8xf32>
    %40 = arith.subf %39, %22 : vector<8x8xf32>
    %cst_17 = arith.constant 0.000000e+00 : f32
    %41 = vector.broadcast %cst_17 : f32 to vector<8x8xf32>
    %42 = arith.subf %41, %24 : vector<8x8xf32>
    %cst_18 = arith.constant dense<0xFF800000> : vector<8xf32>
    %43 = vector.multi_reduction <maximumf>, %42, %cst_18 [1] : vector<8x8xf32> to vector<8xf32>
    %44 = vector.shape_cast %43 : vector<8xf32> to vector<8x1xf32>
    %45 = vector.broadcast %44 : vector<8x1xf32> to vector<8x8xf32>
    %46 = arith.subf %42, %45 : vector<8x8xf32>
    %47 = math.exp %46 : vector<8x8xf32>
    %48 = arith.mulf %47, %40 : vector<8x8xf32>
    %cst_19 = arith.constant dense<0.000000e+00> : vector<8xf32>
    %49 = vector.multi_reduction <add>, %48, %cst_19 [1] : vector<8x8xf32> to vector<8xf32>
    %50 = vector.shape_cast %49 : vector<8xf32> to vector<8x1xf32>
    %cst_20 = arith.constant 9.99999997E-7 : f32
    %51 = vector.broadcast %cst_20 : f32 to vector<8x1xf32>
    %52 = arith.addf %50, %51 : vector<8x1xf32>
    %53 = arith.mulf %24, %48 : vector<8x8xf32>
    %cst_21 = arith.constant dense<0.000000e+00> : vector<8xf32>
    %54 = vector.multi_reduction <add>, %53, %cst_21 [1] : vector<8x8xf32> to vector<8xf32>
    %55 = vector.shape_cast %54 : vector<8xf32> to vector<8x1xf32>
    %56 = arith.divf %55, %52 : vector<8x1xf32>
    %57 = arith.subf %56, %38 : vector<8x1xf32>
    %cst_22 = arith.constant 0.000000e+00 : f32
    %58 = vector.broadcast %cst_22 : f32 to vector<8x1xf32>
    %59 = arith.subf %58, %57 : vector<8x1xf32>
    %cst_23 = arith.constant 0.000000e+00 : f32
    %60 = vector.broadcast %cst_23 : f32 to vector<8x1xf32>
    %61 = arith.maximumf %59, %60 : vector<8x1xf32>
    %62 = math.absf %59 : vector<8x1xf32>
    %cst_24 = arith.constant 0.000000e+00 : f32
    %63 = vector.broadcast %cst_24 : f32 to vector<8x1xf32>
    %64 = arith.subf %63, %62 : vector<8x1xf32>
    %65 = math.exp %64 : vector<8x1xf32>
    %66 = math.log1p %65 : vector<8x1xf32>
    %67 = arith.addf %61, %66 : vector<8x1xf32>
    %c0_25 = arith.constant 0 : index
    %c0_26 = arith.constant 0 : index
    %68 = vector.load %arg6[%c0_25, %c0_26] : memref<8x1xf32, #tpu.memory_space<vmem>>, vector<8x1xf32>
    tpu.vector_store %arg6[%c0_25, %c0_26], %67 {strides = array<i32>} : memref<8x1xf32, #tpu.memory_space<vmem>>, vector<8x1xf32>,
    return
  }
  func.func @transform_0(%arg0: i32) -> (i32, i32) {
    %c0_i32 = arith.constant 0 : i32
    %c0_i32_0 = arith.constant 0 : i32
    return %arg0, %c0_i32 : i32, i32
  }
  func.func @transform_1(%arg0: i32) -> (i32, i32) {
    %c0_i32 = arith.constant 0 : i32
    %c0_i32_0 = arith.constant 0 : i32
    %c0_i32_1 = arith.constant 0 : i32
    return %c0_i32, %c0_i32_0 : i32, i32
  }
  func.func @transform_2(%arg0: i32) -> (i32, i32) {
    %c0_i32 = arith.constant 0 : i32
    %c0_i32_0 = arith.constant 0 : i32
    %c0_i32_1 = arith.constant 0 : i32
    return %c0_i32, %c0_i32_0 : i32, i32
  }
  func.func @transform_3(%arg0: i32) -> (i32, i32) {
    %c0_i32 = arith.constant 0 : i32
    %c0_i32_0 = arith.constant 0 : i32
    return %arg0, %c0_i32 : i32, i32
  }
  func.func @transform_4(%arg0: i32) -> (i32, i32) {
    %c0_i32 = arith.constant 0 : i32
    %c0_i32_0 = arith.constant 0 : i32
    %c0_i32_1 = arith.constant 0 : i32
    return %c0_i32, %c0_i32_0 : i32, i32
  }
  func.func @transform_5(%arg0: i32) -> (i32, i32) {
    %c0_i32 = arith.constant 0 : i32
    %c0_i32_0 = arith.constant 0 : i32
    return %arg0, %c0_i32 : i32, i32
  }
}

</mosaic_0001>

<bundles_post_ra>
// kernel: tpu_custom_call.1
= control target key start
LH: loop header
LB: loop body
LE: loop exit
PB: predicated region body
PF: predicated region fallthrough
CT: control target
= control target key end

     0   :  { %10 = vsyncpa [#allocation3], 0  ;;  %s253_s18 = smov [#allocation2]   ;;  %s320_s0 = inlined_call_operand.vmem [shape: f32[8,128], index: 0, kind: input, shape index: {}]   ;;  %s321_s1 = inlined_call_operand.hbm [shape: f32[8,128], index: 1, kind: input, shape index: {}]   ;;  %s322_s2 = inlined_call_operand.vmem [shape: f32[1,8], index: 2, kind: input, shape index: {}]   ;;  %s323_s3 = inlined_call_operand.vmem [shape: s32[8,1], index: 3, kind: input, shape index: {}]   ;;  %s324_s4 = inlined_call_operand.vmem [shape: s32[1,8], index: 4, kind: input, shape index: {}]   ;;  %s325_s5 = inlined_call_operand.vmem [shape: f32[8,1], index: 5, kind: output, shape index: {}]  }
   0x1   :  { %s19_s19 = sshll.u32 %s253_s18, 4  ;;  %s229_s22 = scalar_lea.hbm %s321_s1, 128  ;;  %s20_s19 = int_to_ptr.vmem [resolvable:$true] %s19_s19 }
   0x2   :  { %p230_p0 = scmp.ne.s32.totalorder %s321_s1, %s229_s22  ;;  %p233_p1 = scmp.lt.u32.totalorder %s229_s22, %s321_s1 }
   0x4   :  { %p235_p2 = pnand %p233_p1, %p230_p0 }
   0x6   :  { %238 = shalt.err (!%p235_p2)
}
   0x7   :  { %s239_s27 = scalar_lea.vmem %s20_s19, 128  ;;  %p244_p4 = scmp.lt.s32.totalorder %s20_s19, %s20_s19 }
   0x8   :  { %p240_p3 = scmp.ne.s32.totalorder %s20_s19, %s239_s27  ;;  %p245_p5 = scmp.lt.s32.totalorder %s239_s27, %s239_s27 }
   0xa   :  { %p246_p6 = por %p245_p5, %p244_p4 }
   0xc   :  { %p247_p7 = pnand %p246_p6, %p240_p3 }
   0xe   :  { %250 = shalt.err (!%p247_p7)
}
   0xf   :  { %22 = dma.hbm_to_vmem [thread:$0]  %s321_s1, 128, %s20_s19, [#allocation3]  }
  0x10   :  { %251 = dma.done.wait [#allocation3], 128  }
  0x11   :  { %252 = vsyncadd [#allocation3], 4294967168  ;;  %v254_v0 = vmov 0.0   ;;  %vm255_vm0 = vmmov 0   ;;  %v256_v1 = vmov 0   ;;  %v33_v2 = vld [vmem:[#allocation2] sm:$0xff] }
  0x12   :  { %205 = vmatprep.subr.mxu0 %v254_v0  ;;  %207 = vmatprep.mubr.msk.f32.mxu0 %vm255_vm0, %v254_v0  ;;  %v32_v3 = vld [vmem:[%s320_s0] sm:$0xff]  ;;  %vm139_vm4 = vcmask 64512   ;;  %vm193_vm6 = vcmask 7168  }
  0x13   :  { %214 = vset.pattern.permute.xlu0 %v256_v1  ;;  %206 = vmatpush3.xpose.msra.mxu0 %v33_v2  ;;  %v104_v4 = vmul.f32 %v32_v3, %v32_v3  ;;  %v125_v5 = vld [vmem:[%s323_s3] sm:$0xff] }
  0x14   :  { %v200_v6 = vld [vmem:[%s322_s2] ss:$0 sm:$0xff] }
  0x15   :  { %105 = vadd.xlane.f32.xlu0 %v104_v4  ;;  %v201_v14 = vld [vmem:[%s324_s4] ss:$0 sm:$0xff] }
  0x16   :  { %208 = vmatmul.mubr.f32.vlgmr.msra.gmra.mrb[0].mxu0 %v32_v3 }
  0x2b   :  { %128 = vperm.xlu0 %214, %v125_v5  }
  0xa2   :  { %v106_v7 = vpop.xlane.xlu0 %105 }
  0xa3   :  { %v114_v8 = vadd.f32 %v200_v6, %v106_v7 }
  0xaa   :  { %v129_v15 = vpop.permute.xlu0 %128 }
  0xab   :  { %vm134_vm1 = vcmp.eq.s32.totalorder %v129_v15, %v201_v14 }
  0xac   :  { %v202_v19 = vsel %vm134_vm1, 1.0, %v254_v0 }
  0xad   :  { %v157_v35 = vsub.f32 1.0, %v202_v19 }
  0xe9   :  { %v100_v9 = vpop.f32.mrb[0].mxu0 }
  0xea   :  { %v115_v10 = vmul.f32 2.0, %v100_v9  ;;  %v209_v11 = vpop.f32.mrb[1].mxu0 }
  0xec   :  { %v116_v12 = vsub.f32 %v114_v8, %v115_v10 }
  0xee   :  { %v117_v13 = vmax.f32 %v116_v12, 1e-12 }
  0xf0   :  { %215 = vrsqrt.f32 %v117_v13  ;;  %vm120_vm2 = vcmp.eq.f32.partialorder %v117_v13, inf  ;;  %v123_v18 = vand.u32 2147483648, %v117_v13  ;;  %vm122_vm3 = vcmp.eq.f32.partialorder %v117_v13, 0.0 }
  0xfa   :  { %v216_v16 = vpop.eup %215 }
  0xfb   :  { %v119_v17 = vmul.f32 %v216_v16, %v117_v13 }
  0xfd   :  { %v121_v20 = vsel %vm120_vm2, %v117_v13, %v119_v17 }
  0xfe   :  { %v124_v21 = vsel %vm122_vm3, %v123_v18, %v121_v20 }
  0xff   :  { %v137_v22 = vmul.f32 %v202_v19, %v124_v21 }
 0x101   :  { %v140_v23 = vsel %vm139_vm4, %v137_v22, -inf  ;;  %v138_v24 = vsub.f32 %v124_v21, %v137_v22 }
 0x102   :  { %141 = vmax.xlane.f32.xlu1 %v140_v23 }
 0x103   :  { %v158_v25 = vsub.f32 0.0, %v138_v24 }
 0x105   :  { %v159_v26 = vsel %vm139_vm4, %v158_v25, -inf }
 0x106   :  { %160 = vmax.xlane.f32.xlu1 %v159_v26 }
 0x18f   :  { %v142_v27 = vpop.xlane.xlu1 %141 }
 0x190   :  { %v143_v28 = vsub.f32 %v137_v22, %v142_v27 }
 0x192   :  { %v144_v29 = vmul.f32 1.442695, %v143_v28 }
 0x193   :  { %v161_v30 = vpop.xlane.xlu1 %160 }
 0x194   :  { %217 = vpow2.f32 %v144_v29  ;;  %v162_v31 = vsub.f32 %v158_v25, %v161_v30 }
 0x196   :  { %v163_v32 = vmul.f32 1.442695, %v162_v31 }
 0x198   :  { %219 = vpow2.f32 %v163_v32 }
 0x19e   :  { %v218_v33 = vpop.eup %217 }
 0x19f   :  { %v146_v34 = vmul.f32 %v218_v33, %v202_v19 }
 0x1a1   :  { %v147_v36 = vsel %vm139_vm4, %v146_v34, 0.0  ;;  %v151_v40 = vmul.f32 %v146_v34, %v137_v22 }
 0x1a2   :  { %v220_v37 = vpop.eup %219  ;;  %148 = vadd.xlane.f32.xlu1 %v147_v36 }
 0x1a3   :  { %v165_v38 = vmul.f32 %v220_v37, %v157_v35  ;;  %v152_v41 = vsel %vm139_vm4, %v151_v40, 0.0 }
 0x1a5   :  { %v166_v39 = vsel %vm139_vm4, %v165_v38, 0.0  ;;  %v170_v42 = vmul.f32 %v165_v38, %v138_v24 }
 0x1a6   :  { %167 = vadd.xlane.f32.xlu1 %v166_v39 }
 0x1a7   :  { %v171_v43 = vsel %vm139_vm4, %v170_v42, 0.0 }
 0x1aa   :  { %153 = vadd.xlane.f32.xlu1 %v152_v41 }
 0x1ae   :  { %172 = vadd.xlane.f32.xlu1 %v171_v43 }
 0x22f   :  { %v149_v44 = vpop.xlane.xlu1 %148 }
 0x230   :  { %v150_v45 = vadd.f32 1e-06, %v149_v44 }
 0x232   :  { %221 = vrcp.f32 %v150_v45 }
 0x233   :  { %v168_v46 = vpop.xlane.xlu1 %167 }
 0x234   :  { %v169_v47 = vadd.f32 1e-06, %v168_v46 }
 0x236   :  { %223 = vrcp.f32 %v169_v47 }
 0x237   :  { %v154_v48 = vpop.xlane.xlu1 %153 }
 0x23b   :  { %v173_v51 = vpop.xlane.xlu1 %172 }
 0x23c   :  { %v222_v49 = vpop.eup %221 }
 0x23d   :  { %v156_v52 = vmul.f32 %v222_v49, %v154_v48 }
 0x240   :  { %v224_v50 = vpop.eup %223 }
 0x241   :  { %v175_v53 = vmul.f32 %v224_v50, %v173_v51 }
 0x243   :  { %v176_v54 = vsub.f32 %v175_v53, %v156_v52 }
 0x245   :  { %v177_v55 = vsub.f32 0.0, %v176_v54 }
 0x247   :  { %v179_v56 = vand.u32 2147483647, %v177_v55  ;;  %v178_v3 = vmax.f32 %v177_v55, 0.0 }
 0x249   :  { %v180_v57 = vsub.f32 0.0, %v179_v56 }
 0x24b   :  { %v181_v58 = vmul.f32 1.442695, %v180_v57 }
 0x24d   :  { %225 = vpow2.f32 %v181_v58 }
 0x257   :  { %v226_v59 = vpop.eup %225 }
 0x258   :  { %v183_v60 = vadd.f32 1.0, %v226_v59  ;;  %v186_v61 = vmul.f32 -0.5, %v226_v59  ;;  %v189_v63 = vand.u32 2147483647, %v226_v59 }
 0x25a   :  { %227 = vlog2.f32 %v183_v60  ;;  %v187_v62 = vadd.f32 1.0, %v186_v61  ;;  %vm190_vm5 = vcmp.lt.f32.partialorder %v189_v63, 0.0004427343 }
 0x25c   :  { %v188_v2 = vmul.f32 %v226_v59, %v187_v62 }
 0x264   :  { %v228_v0 = vpop.eup %227 }
 0x265   :  { %v185_v1 = vmul.f32 0.6931472, %v228_v0 }
 0x267   :  { %v191_v4 = vsel %vm190_vm5, %v188_v2, %v185_v1 }
 0x268   :  { %v192_v5 = vadd.f32 %v191_v4, %v178_v3 }
 0x26a   :  { %194 = vst.msk [vmem:[%s325_s5] sm:$0xff] %vm193_vm6, %v192_v5 }
 0x26b   :  { %199 = vsyncpa [#allocation3], 1 }

</bundles_post_ra>
